<compile_context>
chip_gen: v7x
topology: tpu7x:2x2x1
jax: 0.10.0
libtpu: 0.0.40
codegen_flags: <defaults>
</compile_context>

<pallas_src>
import functools

import jax
import jax.numpy as jnp
from jax.experimental import pallas as pl
from jax.experimental.pallas import tpu as pltpu


def _round_up(x: int, m: int) -> int:
    return ((x + m - 1) // m) * m


def _ffn_kernel(*refs, dropout_active: bool):
    """One (row_tile, ff_chunk) step of the feed-forward layer.

    Inputs (VMEM tiles):
      x_ref   : [TR, d_model]        bf16
      w1_ref  : [d_model, ff_chunk]  bf16   (proj1.weight.T slice)
      b1_ref  : [1, ff_chunk]        f32
      mask_ref: [TR, ff_chunk]       f32    (only when dropout_active;
                                             values in {0, 1/(1-p)})
      w0_ref  : [ff_chunk, d_model]  bf16   (proj0.weight.T slice)
      b0_ref  : [1, d_model]         f32
    Output:
      o_ref   : [TR, d_model]
    Scratch:
      acc_ref : [TR, d_model]        f32 accumulator across ff chunks
    """
    if dropout_active:
        x_ref, w1_ref, b1_ref, mask_ref, w0_ref, b0_ref, o_ref, acc_ref = refs
    else:
        x_ref, w1_ref, b1_ref, w0_ref, b0_ref, o_ref, acc_ref = refs
        mask_ref = None

    j = pl.program_id(1)

    @pl.when(j == 0)
    def _():
        acc_ref[...] = jnp.zeros_like(acc_ref)

    # proj1 (bf16 MXU, f32 accumulate) + bias + ReLU
    h = jnp.dot(x_ref[...], w1_ref[...], preferred_element_type=jnp.float32)
    h = h + b1_ref[...]
    h = jnp.maximum(h, 0.0)

    # Inverted dropout: mask already carries the 1/(1-p) scale -> single VPU mul.
    if mask_ref is not None:
        h = h * mask_ref[...]

    # proj0 partial product, accumulated over ff chunks.
    acc_ref[...] += jnp.dot(h.astype(w0_ref.dtype), w0_ref[...],
                            preferred_element_type=jnp.float32)

    @pl.when(j == pl.num_programs(1) - 1)
    def _():
        o_ref[...] = (acc_ref[...] + b0_ref[...]).astype(o_ref.dtype)


def feed_forward_layer(x, w1, b1, w0, b0, *, dropout_p=0.0, dropout_key=None,
                       row_tile=256, ff_chunk=512):
    """x: [..., d_model].  w1: [d_model, d_ff] (= proj1.weight.T),
    w0: [d_ff, d_model] (= proj0.weight.T).  Returns same shape/dtype as x."""
    d_model = x.shape[-1]
    d_ff = w1.shape[1]
    orig_shape = x.shape

    x2 = x.reshape(-1, d_model)
    rows = x2.shape[0]

    # --- row tiling: fixed tile (multiple of 8 sublanes), pad rows up to it ---
    rt = min(int(row_tile), _round_up(rows, 8))
    rows_p = _round_up(rows, rt)
    if rows_p != rows:
        x2 = jnp.pad(x2, ((0, rows_p - rows), (0, 0)))
    n_rt = rows_p // rt

    # --- d_ff chunking (chunk must be a multiple of 128 and divide d_ff,
    #     otherwise fall back to a single full-d_ff chunk) ---
    fc = int(ff_chunk)
    if d_ff % fc != 0 or fc % 128 != 0:
        fc = d_ff
    n_ff = d_ff // fc

    # --- bf16 matmul operands, f32 biases ---
    x_b = x2.astype(jnp.bfloat16)
    w1_b = w1.astype(jnp.bfloat16)
    w0_b = w0.astype(jnp.bfloat16)
    b1_2 = b1.reshape(1, d_ff).astype(jnp.float32)
    b0_2 = b0.reshape(1, d_model).astype(jnp.float32)

    use_dropout = float(dropout_p) > 0.0

    inputs = [x_b, w1_b, b1_2]
    in_specs = [
        pl.BlockSpec((rt, d_model), lambda i, j: (i, 0)),
        pl.BlockSpec((d_model, fc), lambda i, j: (0, j)),
        pl.BlockSpec((1, fc),       lambda i, j: (0, j)),
    ]

    mask_bytes = 0
    if use_dropout:
        # TODO(synk): in-kernel TPU PRNG (pltpu.prng_*) does not lower under the
        # CPU interpreter; the dropout mask is generated here and streamed in.
        if dropout_key is None:
            dropout_key = jax.random.PRNGKey(0)
        keep = jax.random.bernoulli(dropout_key, 1.0 - float(dropout_p),
                                    (rows_p, d_ff))
        mask = jnp.where(keep, jnp.float32(1.0 / (1.0 - float(dropout_p))),
                         jnp.float32(0.0))
        inputs.append(mask)
        in_specs.append(pl.BlockSpec((rt, fc), lambda i, j: (i, j)))
        mask_bytes = rows_p * d_ff * 4

    inputs += [w0_b, b0_2]
    in_specs += [
        pl.BlockSpec((fc, d_model), lambda i, j: (j, 0)),
        pl.BlockSpec((1, d_model),  lambda i, j: (0, 0)),
    ]

    flops = 4 * rows_p * d_model * d_ff          # two matmuls
    bytes_accessed = (rows_p * d_model * 2       # x (bf16)
                      + 2 * d_model * d_ff * 2   # w1 + w0 (bf16)
                      + rows_p * d_model * 4     # out (f32)
                      + mask_bytes)

    out = pl.pallas_call(
        functools.partial(_ffn_kernel, dropout_active=use_dropout),
        out_shape=jax.ShapeDtypeStruct((rows_p, d_model), x.dtype),
        grid_spec=pltpu.PrefetchScalarGridSpec(
            num_scalar_prefetch=0,
            grid=(n_rt, n_ff),
            in_specs=in_specs,
            out_specs=pl.BlockSpec((rt, d_model), lambda i, j: (i, 0)),
            scratch_shapes=[pltpu.VMEM((rt, d_model), jnp.float32)],
        ),
        compiler_params=pltpu.CompilerParams(
            dimension_semantics=("parallel", "arbitrary"),
            vmem_limit_bytes=64 * 1024 * 1024,
        ),
        cost_estimate=pl.CostEstimate(flops=flops, transcendentals=0,
                                      bytes_accessed=bytes_accessed),
    )(*inputs)

    return out[:rows].reshape(orig_shape)


def xavier_uniform(key, fan_in, fan_out, dtype=jnp.float32):
    """Matches torch.nn.init.xavier_uniform_ for a [fan_out, fan_in] weight,
    stored directly as its transpose [fan_in, fan_out]."""
    limit = (6.0 / (fan_in + fan_out)) ** 0.5
    return jax.random.uniform(key, (fan_in, fan_out), dtype,
                              minval=-limit, maxval=limit)


if __name__ == "__main__":
    d_model, d_ff, dropout_p = 32, 64, 0.1
    batch, seq = 2, 8

    key = jax.random.PRNGKey(0)
    k_x, k_w1, k_w0, k_drop = jax.random.split(key, 4)

    x = jax.random.normal(k_x, (batch, seq, d_model), dtype=jnp.float32)
    w1 = xavier_uniform(k_w1, d_model, d_ff)          # proj1.weight.T
    b1 = jnp.zeros((d_ff,), jnp.float32)              # proj1.bias
    w0 = xavier_uniform(k_w0, d_ff, d_model)          # proj0.weight.T
    b0 = jnp.zeros((d_model,), jnp.float32)           # proj0.bias

    # Sanity check (dropout disabled) against a plain-JAX f32 reference.
    # Tolerance is loosened because the kernel runs its matmuls in bf16
    # (f32 accumulation).
    y_nodrop = feed_forward_layer(x, w1, b1, w0, b0, dropout_p=0.0)
    ref = jnp.maximum(x @ w1 + b1, 0.0) @ w0 + b0
    assert y_nodrop.shape == x.shape
    assert jnp.allclose(y_nodrop, ref, atol=5e-2, rtol=5e-2), (
        float(jnp.max(jnp.abs(y_nodrop - ref))))

    # Full forward with training-mode dropout (deterministic via fixed key).
    y = feed_forward_layer(x, w1, b1, w0, b0, dropout_p=dropout_p,
                           dropout_key=k_drop)
    jax.block_until_ready(y)
    assert y.shape == x.shape
    print("KERNEL_OK")
</pallas_src>

<mosaic_0001>
module attributes {stable_mosaic.version = 11 : i64} {
  func.func @_ffn_kernel(%arg0: i32, %arg1: i32, %arg2: memref<16x32xbf16, #tpu.memory_space<vmem>>, %arg3: memref<32x64xbf16, #tpu.memory_space<vmem>>, %arg4: memref<1x64xf32, #tpu.memory_space<vmem>>, %arg5: memref<64x32xbf16, #tpu.memory_space<vmem>>, %arg6: memref<1x32xf32, #tpu.memory_space<vmem>>, %arg7: memref<16x32xf32, #tpu.memory_space<vmem>>, %arg8: memref<16x32xf32, #tpu.memory_space<vmem>>) attributes {dimension_semantics = [#tpu.dimension_semantics<parallel>, #tpu.dimension_semantics<arbitrary>], iteration_bounds = array<i64: 1, 1>, scalar_prefetch = 0 : i64, scratch_operands = 1 : i64, tpu.core_type = #tpu.core_type<tc>, window_params = [{transform_indices = @transform_0, window_bounds = array<i64: 16, 32>}, {transform_indices = @transform_1, window_bounds = array<i64: 32, 64>}, {transform_indices = @transform_2, window_bounds = array<i64: 1, 64>}, {transform_indices = @transform_3, window_bounds = array<i64: 64, 32>}, {pipeline_mode = #tpu.pipeline_mode<synchronous>, transform_indices = @transform_4, window_bounds = array<i64: 1, 32>}, {transform_indices = @transform_5, window_bounds = array<i64: 16, 32>}]} {
    %c0_i32 = arith.constant 0 : i32
    %0 = arith.cmpi eq, %arg1, %c0_i32 : i32
    %1 = arith.extui %0 : i1 to i32
    %c0_i32_0 = arith.constant 0 : i32
    %2 = arith.cmpi ne, %1, %c0_i32_0 : i32
    scf.if %2 {
      %cst_16 = arith.constant 0.000000e+00 : f32
      %20 = vector.broadcast %cst_16 : f32 to vector<16x32xf32>
      %c0_17 = arith.constant 0 : index
      %c0_18 = arith.constant 0 : index
      %21 = vector.load %arg8[%c0_17, %c0_18] : memref<16x32xf32, #tpu.memory_space<vmem>>, vector<16x32xf32>
      tpu.vector_store %arg8[%c0_17, %c0_18], %20 {strides = array<i32>} : memref<16x32xf32, #tpu.memory_space<vmem>>, vector<16x32xf32>,
    } else {
    }
    %c0 = arith.constant 0 : index
    %c0_1 = arith.constant 0 : index
    %3 = vector.load %arg2[%c0, %c0_1] : memref<16x32xbf16, #tpu.memory_space<vmem>>, vector<16x32xbf16>
    %c0_2 = arith.constant 0 : index
    %c0_3 = arith.constant 0 : index
    %4 = vector.load %arg3[%c0_2, %c0_3] : memref<32x64xbf16, #tpu.memory_space<vmem>>, vector<32x64xbf16>
    %cst = arith.constant dense<0.000000e+00> : vector<16x64xf32>
    %5 = tpu.matmul %3, %4, %cst {dimension_numbers = #tpu.dot_dimension_numbers<[1], [0], [0], [1], [0, 0, 1, 1], [], []>} : vector<16x32xbf16>, vector<32x64xbf16>, vector<16x64xf32> -> vector<16x64xf32>
    %c0_4 = arith.constant 0 : index
    %c0_5 = arith.constant 0 : index
    %6 = vector.load %arg4[%c0_4, %c0_5] : memref<1x64xf32, #tpu.memory_space<vmem>>, vector<1x64xf32>
    %7 = vector.broadcast %6 : vector<1x64xf32> to vector<16x64xf32>
    %8 = arith.addf %5, %7 : vector<16x64xf32>
    %cst_6 = arith.constant 0.000000e+00 : f32
    %9 = vector.broadcast %cst_6 : f32 to vector<16x64xf32>
    %10 = arith.maximumf %8, %9 : vector<16x64xf32>
    %c0_7 = arith.constant 0 : index
    %c0_8 = arith.constant 0 : index
    %11 = vector.load %arg8[%c0_7, %c0_8] : memref<16x32xf32, #tpu.memory_space<vmem>>, vector<16x32xf32>
    %12 = arith.truncf %10 : vector<16x64xf32> to vector<16x64xbf16>
    %c0_9 = arith.constant 0 : index
    %c0_10 = arith.constant 0 : index
    %13 = vector.load %arg5[%c0_9, %c0_10] : memref<64x32xbf16, #tpu.memory_space<vmem>>, vector<64x32xbf16>
    %cst_11 = arith.constant dense<0.000000e+00> : vector<16x32xf32>
    %14 = tpu.matmul %12, %13, %cst_11 {dimension_numbers = #tpu.dot_dimension_numbers<[1], [0], [0], [1], [0, 0, 1, 1], [], []>} : vector<16x64xbf16>, vector<64x32xbf16>, vector<16x32xf32> -> vector<16x32xf32>
    %15 = arith.addf %11, %14 : vector<16x32xf32>
    %c0_12 = arith.constant 0 : index
    %c0_13 = arith.constant 0 : index
    %16 = vector.load %arg8[%c0_12, %c0_13] : memref<16x32xf32, #tpu.memory_space<vmem>>, vector<16x32xf32>
    tpu.vector_store %arg8[%c0_12, %c0_13], %15 {strides = array<i32>} : memref<16x32xf32, #tpu.memory_space<vmem>>, vector<16x32xf32>,
    %c0_i32_14 = arith.constant 0 : i32
    %17 = arith.cmpi eq, %arg1, %c0_i32_14 : i32
    %18 = arith.extui %17 : i1 to i32
    %c0_i32_15 = arith.constant 0 : i32
    %19 = arith.cmpi ne, %18, %c0_i32_15 : i32
    scf.if %19 {
      %c0_16 = arith.constant 0 : index
      %c0_17 = arith.constant 0 : index
      %20 = vector.load %arg8[%c0_16, %c0_17] : memref<16x32xf32, #tpu.memory_space<vmem>>, vector<16x32xf32>
      %c0_18 = arith.constant 0 : index
      %c0_19 = arith.constant 0 : index
      %21 = vector.load %arg6[%c0_18, %c0_19] : memref<1x32xf32, #tpu.memory_space<vmem>>, vector<1x32xf32>
      %22 = vector.broadcast %21 : vector<1x32xf32> to vector<16x32xf32>
      %23 = arith.addf %20, %22 : vector<16x32xf32>
      %c0_20 = arith.constant 0 : index
      %c0_21 = arith.constant 0 : index
      %24 = vector.load %arg7[%c0_20, %c0_21] : memref<16x32xf32, #tpu.memory_space<vmem>>, vector<16x32xf32>
      tpu.vector_store %arg7[%c0_20, %c0_21], %23 {strides = array<i32>} : memref<16x32xf32, #tpu.memory_space<vmem>>, vector<16x32xf32>,
    } else {
    }
    return
  }
  func.func @transform_0(%arg0: i32, %arg1: i32) -> (i32, i32) {
    %c0_i32 = arith.constant 0 : i32
    %c0_i32_0 = arith.constant 0 : i32
    return %arg0, %c0_i32 : i32, i32
  }
  func.func @transform_1(%arg0: i32, %arg1: i32) -> (i32, i32) {
    %c0_i32 = arith.constant 0 : i32
    %c0_i32_0 = arith.constant 0 : i32
    return %c0_i32, %arg1 : i32, i32
  }
  func.func @transform_2(%arg0: i32, %arg1: i32) -> (i32, i32) {
    %c0_i32 = arith.constant 0 : i32
    %c0_i32_0 = arith.constant 0 : i32
    return %c0_i32, %arg1 : i32, i32
  }
  func.func @transform_3(%arg0: i32, %arg1: i32) -> (i32, i32) {
    %c0_i32 = arith.constant 0 : i32
    %c0_i32_0 = arith.constant 0 : i32
    return %arg1, %c0_i32 : i32, i32
  }
  func.func @transform_4(%arg0: i32, %arg1: i32) -> (i32, i32) {
    %c0_i32 = arith.constant 0 : i32
    %c0_i32_0 = arith.constant 0 : i32
    %c0_i32_1 = arith.constant 0 : i32
    return %c0_i32, %c0_i32_0 : i32, i32
  }
  func.func @transform_5(%arg0: i32, %arg1: i32) -> (i32, i32) {
    %c0_i32 = arith.constant 0 : i32
    %c0_i32_0 = arith.constant 0 : i32
    return %arg0, %c0_i32 : i32, i32
  }
}

</mosaic_0001>

<bundles_post_ra>
// kernel: tpu_custom_call.1
= control target key start
LH: loop header
LB: loop body
LE: loop exit
PB: predicated region body
PF: predicated region fallthrough
CT: control target
= control target key end

     0   :  { %10 = vsyncpa [#allocation4], 0  ;;  %s624_s0 = inlined_call_operand.hbm [shape: bf16[16,32], index: 0, kind: input, shape index: {}]   ;;  %s625_s1 = inlined_call_operand.hbm [shape: bf16[32,64], index: 1, kind: input, shape index: {}]   ;;  %s626_s2 = inlined_call_operand.hbm [shape: f32[1,64], index: 2, kind: input, shape index: {}]   ;;  %s627_s3 = inlined_call_operand.hbm [shape: bf16[64,32], index: 3, kind: input, shape index: {}]   ;;  %s628_s4 = inlined_call_operand.hbm [shape: f32[1,32], index: 4, kind: input, shape index: {}]   ;;  %s629_s5 = inlined_call_operand.hbm [shape: f32[16,32], index: 5, kind: output, shape index: {}]  }
   0x1   :  { %11 = vsyncpa [#allocation7], 0 }
   0x2   :  { %12 = vsyncpa [#allocation10], 0 }
   0x3   :  { %13 = vsyncpa [#allocation5], 0  ;;  %s487_s18 = smov [#allocation6]   ;;  %s488_s20 = smov [#allocation9]  }
   0x4   :  { %s31_s19 = sshll.u32 %s487_s18, 4  ;;  %s53_s21 = sshll.u32 %s488_s20, 4  ;;  %s32_s19 = int_to_ptr.vmem [resolvable:$true] %s31_s19  ;;  %s529_s21 = int_to_ptr.vmem [resolvable:$true] %s53_s21 }
   0x5   :  { %s347_s24 = scalar_lea.hbm %s625_s1, 256 }
   0x6   :  { %p348_p0 = scmp.ne.s32.totalorder %s625_s1, %s347_s24  ;;  %p351_p1 = scmp.lt.u32.totalorder %s347_s24, %s625_s1 }
   0x8   :  { %p353_p2 = pnand %p351_p1, %p348_p0 }
   0xa   :  { %356 = shalt.err (!%p353_p2)
}
   0xb   :  { %s357_s29 = scalar_lea.vmem %s32_s19, 256  ;;  %p362_p4 = scmp.lt.s32.totalorder %s32_s19, %s32_s19 }
   0xc   :  { %p358_p3 = scmp.ne.s32.totalorder %s32_s19, %s357_s29  ;;  %p363_p5 = scmp.lt.s32.totalorder %s357_s29, %s357_s29 }
   0xe   :  { %p364_p6 = por %p363_p5, %p362_p4 }
  0x10   :  { %p365_p7 = pnand %p364_p6, %p358_p3 }
  0x12   :  { %368 = shalt.err (!%p365_p7)
}
  0x13   :  { %s489_s30 = smov 64   ;;  %s490_s6 = smov 4  }
  0x14   :  { %37 = dma.hbm_to_vmem [thread:$0]  %s625_s1, 256, %s32_s19, [#allocation7], %s489_s30, %s489_s30, %s490_s6  }
  0x15   :  { %s369_s11 = scalar_lea.hbm %s627_s3, 512 }
  0x16   :  { %p370_p8 = scmp.ne.s32.totalorder %s627_s3, %s369_s11  ;;  %p373_p9 = scmp.lt.u32.totalorder %s369_s11, %s627_s3 }
  0x18   :  { %p375_p10 = pnand %p373_p9, %p370_p8 }
  0x1a   :  { %378 = shalt.err (!%p375_p10)
}
  0x1b   :  { %s379_s16 = scalar_lea.vmem %s529_s21, 512  ;;  %p384_p12 = scmp.lt.s32.totalorder %s529_s21, %s529_s21 }
  0x1c   :  { %p380_p11 = scmp.ne.s32.totalorder %s529_s21, %s379_s16  ;;  %p385_p13 = scmp.lt.s32.totalorder %s379_s16, %s379_s16 }
  0x1e   :  { %p386_p0 = por %p385_p13, %p384_p12 }
  0x20   :  { %p387_p1 = pnand %p386_p0, %p380_p11 }
  0x22   :  { %390 = shalt.err (!%p387_p1)
}
  0x23   :  { %59 = dma.hbm_to_vmem [thread:$0]  %s627_s3, 512, %s529_s21, [#allocation10], %s489_s30, %s489_s30, %s490_s6  }
  0x24   :  { %s491_s18 = smov [#allocation3]   ;;  %s492_s20 = smov [#allocation8]  }
  0x25   :  { %s19_s19 = sshll.u32 %s491_s18, 4  ;;  %s44_s22 = sshll.u32 %s492_s20, 4  ;;  %s20_s19 = int_to_ptr.vmem [resolvable:$true] %s19_s19  ;;  %s45_s22 = int_to_ptr.vmem [resolvable:$true] %s44_s22 }
  0x26   :  { %s391_s25 = scalar_lea.hbm %s624_s0, 128 }
  0x27   :  { %p392_p2 = scmp.ne.s32.totalorder %s624_s0, %s391_s25  ;;  %p395_p3 = scmp.lt.u32.totalorder %s391_s25, %s624_s0 }
  0x29   :  { %p397_p4 = pnand %p395_p3, %p392_p2 }
  0x2b   :  { %400 = shalt.err (!%p397_p4)
}
  0x2c   :  { %s401_s3 = scalar_lea.vmem %s20_s19, 128  ;;  %p406_p6 = scmp.lt.s32.totalorder %s20_s19, %s20_s19 }
  0x2d   :  { %p402_p5 = scmp.ne.s32.totalorder %s20_s19, %s401_s3  ;;  %p407_p7 = scmp.lt.s32.totalorder %s401_s3, %s401_s3 }
  0x2f   :  { %p408_p8 = por %p407_p7, %p406_p6 }
  0x31   :  { %p409_p9 = pnand %p408_p8, %p402_p5 }
  0x33   :  { %412 = shalt.err (!%p409_p9)
}
  0x34   :  { %25 = dma.hbm_to_vmem [thread:$0]  %s624_s0, 128, %s20_s19, [#allocation4], %s489_s30, %s489_s30, %s490_s6  }
  0x35   :  { %s413_s10 = scalar_lea.hbm %s626_s2, 16 }
  0x36   :  { %p414_p10 = scmp.ne.s32.totalorder %s626_s2, %s413_s10  ;;  %p417_p11 = scmp.lt.u32.totalorder %s413_s10, %s626_s2 }
  0x38   :  { %p419_p12 = pnand %p417_p11, %p414_p10 }
  0x3a   :  { %422 = shalt.err (!%p419_p12)
}
  0x3b   :  { %s423_s15 = scalar_lea.vmem %s45_s22, 16  ;;  %s427_s16 = scalar_lea.vmem %s45_s22, 32 }
  0x3c   :  { %p424_p13 = scmp.ne.s32.totalorder %s45_s22, %s423_s15  ;;  %p428_p0 = scmp.lt.s32.totalorder %s45_s22, %s45_s22 }
  0x3d   :  { %p429_p1 = scmp.lt.s32.totalorder %s427_s16, %s423_s15 }
  0x3f   :  { %p430_p2 = por %p429_p1, %p428_p0 }
  0x41   :  { %p431_p3 = pnand %p430_p2, %p424_p13 }
  0x43   :  { %434 = shalt.err (!%p431_p3)
}
  0x44   :  { %47 = dma.hbm_to_vmem [thread:$0]  %s626_s2, 16, %s45_s22, [#allocation7]  }
  0x45   :  { %s493_s6 = smov [#allocation11]   ;;  %s435_s19 = scalar_lea.hbm %s628_s4, 16 }
  0x46   :  { %s66_s1 = sshll.u32 %s493_s6, 4  ;;  %p436_p4 = scmp.ne.s32.totalorder %s628_s4, %s435_s19  ;;  %s67_s1 = int_to_ptr.vmem [resolvable:$true] %s66_s1 }
  0x47   :  { %p439_p5 = scmp.lt.u32.totalorder %s435_s19, %s628_s4 }
  0x49   :  { %p441_p6 = pnand %p439_p5, %p436_p4 }
  0x4b   :  { %444 = shalt.err (!%p441_p6)
}
  0x4c   :  { %s445_s26 = scalar_lea.vmem %s67_s1, 16  ;;  %s449_s2 = scalar_lea.vmem %s67_s1, 32 }
  0x4d   :  { %p446_p7 = scmp.ne.s32.totalorder %s67_s1, %s445_s26  ;;  %p450_p8 = scmp.lt.s32.totalorder %s67_s1, %s67_s1 }
  0x4e   :  { %p451_p9 = scmp.lt.s32.totalorder %s449_s2, %s445_s26 }
  0x50   :  { %p452_p10 = por %p451_p9, %p450_p8 }
  0x52   :  { %p453_p11 = pnand %p452_p10, %p446_p7 }
  0x54   :  { %456 = shalt.err (!%p453_p11)
}
  0x55   :  { %69 = dma.hbm_to_vmem [thread:$0]  %s628_s4, 16, %s67_s1, [#allocation10]  }
  0x56   :  { %479 = dma.done.wait [#allocation4], 128  }
  0x57   :  { %480 = vsyncadd [#allocation4], 4294967168 }
  0x58   :  { %481 = dma.done.wait [#allocation7], 272  }
  0x59   :  { %482 = vsyncadd [#allocation7], 4294967024 }
  0x5a   :  { %483 = dma.done.wait [#allocation10], 528  }
  0x5b   :  { %484 = vsyncadd [#allocation10], 4294966768  ;;  %vm90_vm0 = vcmask 261120   ;;  %v494_v0 = vmov 0.0   ;;  %vm495_vm1 = vmmov 0   ;;  %v340_v1 = vld [vmem:[#allocation6] sm:$0xff]  }
  0x5c   :  { %308 = vmatprep.subr.bf16.mxu0 %v494_v0  ;;  %312 = vmatprep.mubr.msk.bf16.mxu0 %vm495_vm1, %v494_v0  ;;  %91 = vst.msk [vmem:[#allocation2] sm:$0xff] %vm90_vm0, %v494_v0  ;;  %92 = vst.msk [vmem:[#allocation2 + $0x8] sm:$0xff] %vm90_vm0, %v494_v0  ;;  %v341_v2 = vld [vmem:[#allocation6 + $0x8] sm:$0xff]   ;;  %v343_v3 = vld [vmem:[#allocation9] sm:$0xff]   ;;  %vm205_vm2 = vcmask 523264   ;;  %s496_s4 = smov [#allocation12]  }
  0x5d   :  { %316 = vmatprep.subr.bf16.mxu1 %v494_v0  ;;  %324 = vmatprep.mubr.msk.bf16.mxu1 %vm495_vm1, %v494_v0  ;;  %v342_v4 = vld [vmem:[#allocation3] sm:$0xff]   ;;  %v345_v6 = vld [vmem:[#allocation9 + $0x10] sm:$0xff]   ;;  %v346_v7 = vld [vmem:[#allocation9 + $0x18] sm:$0xff]   ;;  %s275_s28 = sshll.u32 %s496_s4, 4  ;;  %s276_s28 = int_to_ptr.vmem [resolvable:$true] %s275_s28 }
  0x5e   :  { %309 = vmatpush3.bf16.msra.mxu0 %v340_v1  ;;  %317 = vmatpush3.bf16.msra.mxu1 %v343_v3  ;;  %v344_v5 = vld [vmem:[#allocation9 + $0x8] sm:$0xff]   ;;  %v289_v8 = vld [vmem:[#allocation8] ss:$0 sm:$0xff]  ;;  %v299_v26 = vld [vmem:[#allocation11] ss:$0 sm:$0xff]  ;;  %s457_s29 = scalar_lea.vmem %s276_s28, 256  ;;  %p462_p13 = scmp.lt.s32.totalorder %s276_s28, %s276_s28 }
  0x5f   :  { %310 = vmatprep.subr.bf16.mxu0 %v494_v0  ;;  %318 = vmatprep.subr.bf16.mxu1 %v494_v0  ;;  %p458_p12 = scmp.ne.s32.totalorder %s276_s28, %s457_s29  ;;  %p463_p0 = scmp.lt.s32.totalorder %s457_s29, %s457_s29 }
  0x61   :  { %p464_p1 = por %p463_p0, %p462_p13 }
  0x62   :  { %311 = vmatpush3.bf16.msra.mxu0 %v341_v2  ;;  %319 = vmatpush3.bf16.msra.mxu1 %v344_v5 }
  0x63   :  { %320 = vmatprep.subr.bf16.mxu1 %v494_v0  ;;  %v170_v18 = vld [vmem:[#allocation2] sm:$0xff]  ;;  %v171_v20 = vld [vmem:[#allocation2 + $0x8] sm:$0xff]  ;;  %p465_p2 = pnand %p464_p1, %p458_p12 }
  0x65   :  { %313 = vmatmul.mubr.msk.bf16.vlgmr.msra.gmra.mrb[0].mxu0 %vm90_vm0, %v342_v4 }
  0x66   :  { %321 = vmatpush3.bf16.msra.mxu1 %v345_v6 }
  0x67   :  { %322 = vmatprep.subr.bf16.mxu1 %v494_v0 }
  0x6a   :  { %323 = vmatpush3.bf16.msra.mxu1 %v346_v7 }
 0x138   :  { %v161_v9 = vpop.f32.mrb[0].mxu0 }
 0x139   :  { %v162_v10 = vadd.f32 %v289_v8, %v161_v9  ;;  %v314_v11 = vpop.f32.mrb[1].mxu0 }
 0x13a   :  { %v164_v12 = vpop.f32.mrb[2].mxu0 }
 0x13b   :  { %v165_v13 = vadd.f32 %v289_v8, %v164_v12  ;;  %v315_v14 = vpop.f32.mrb[3].mxu0  ;;  %v168_v15 = vmax.f32 %v162_v10, 0.0 }
 0x13d   :  { %v169_v16 = vmax.f32 %v165_v13, 0.0 }
 0x13f   :  { %v172_v17 = vpack.c.bf16 %v169_v16, %v168_v15 }
 0x141   :  { %325 = vmatmul.mubr.msk.bf16.vlgmr.msra.gmra.mrb[0].mxu1 %vm205_vm2, %v172_v17 }
 0x214   :  { %v243_v19 = vpop.f32.mrb[0].mxu1 }
 0x215   :  { %v250_v21 = vadd.f32 %v243_v19, %v170_v18  ;;  %v326_v22 = vpop.f32.mrb[1].mxu1 }
 0x216   :  { %v246_v23 = vpop.f32.mrb[2].mxu1 }
 0x217   :  { %252 = vst.msk [vmem:[#allocation2] sm:$0xff] %vm90_vm0, %v250_v21  ;;  %v251_v24 = vadd.f32 %v246_v23, %v171_v20  ;;  %v327_v25 = vpop.f32.mrb[3].mxu1 }
 0x219   :  { %253 = vst.msk [vmem:[#allocation2 + $0x8] sm:$0xff] %vm90_vm0, %v251_v24 }
 0x21e   :  { %v257_v27 = vld [vmem:[#allocation2] sm:$0xff] }
 0x21f   :  { %v266_v28 = vadd.f32 %v299_v26, %v257_v27 }
 0x220   :  { %v258_v29 = vld [vmem:[#allocation2 + $0x8] sm:$0xff] }
 0x221   :  { %v267_v30 = vadd.f32 %v299_v26, %v258_v29  ;;  %268 = vst.msk [vmem:[#allocation12] sm:$0xff] %vm90_vm0, %v266_v28 }
 0x223   :  { %269 = vst.msk [vmem:[#allocation12 + $0x8] sm:$0xff] %vm90_vm0, %v267_v30 }
 0x224   :  { %468 = shalt.err (!%p465_p2)
}
 0x225   :  { %s469_s7 = scalar_lea.hbm %s629_s5, 256 }
 0x226   :  { %p470_p3 = scmp.ne.s32.totalorder %s629_s5, %s469_s7  ;;  %p473_p4 = scmp.lt.u32.totalorder %s469_s7, %s629_s5 }
 0x228   :  { %p475_p5 = pnand %p473_p4, %p470_p3 }
 0x22a   :  { %478 = shalt.err (!%p475_p5)
}
 0x22b   :  { %s497_s12 = smov 128   ;;  %s498_s13 = smov 8  }
 0x22c   :  { %281 = dma.vmem_to_hbm [thread:$0]  %s276_s28, 256, %s629_s5, [#allocation5], %s497_s12, %s497_s12, %s498_s13  }
 0x22d   :  { %485 = dma.done.wait [#allocation5], 256  }
 0x22e   :  { %486 = vsyncadd [#allocation5], 4294967040 }
 0x22f   :  { %285 = vsyncpa [#allocation4], 1 }
 0x230   :  { %286 = vsyncpa [#allocation7], 1 }
 0x231   :  { %287 = vsyncpa [#allocation10], 1 }
 0x232   :  { %288 = vsyncpa [#allocation5], 1 }

</bundles_post_ra>
